<compile_context>
chip_gen: v7x
topology: tpu7x:2x2x1
jax: 0.10.0
libtpu: 0.0.40
codegen_flags: <defaults>
</compile_context>

<pallas_src>
import math

import jax
import jax.numpy as jnp
from jax.experimental import pallas as pl
from jax.experimental.pallas import tpu as pltpu


def _round_up(x, m):
    return ((x + m - 1) // m) * m


def item_embedding_kernel(x_ref, *refs):
    """Fused MLP chain: [Linear -> sigmoid] * n_layer on one batch tile.

    refs = (w0, b0, w1, b1, ..., w_{L-1}, b_{L-1}, out_ref).
    Weights/activations are bf16 (MXU fast path); accumulation, bias add and
    sigmoid are f32 (sigmoid's exp goes to the EUP slot).
    """
    out_ref = refs[-1]
    params = refs[:-1]
    n_layers = len(params) // 2

    h = x_ref[...]                              # bf16 (TB, in_dim)
    for l in range(n_layers):
        w = params[2 * l][...]                  # bf16 (K, N)
        b = params[2 * l + 1][...]              # f32  (1, N)
        z = jnp.dot(h, w, preferred_element_type=jnp.float32) + b
        a = 1.0 / (1.0 + jnp.exp(-z))           # sigmoid, f32
        h = a.astype(jnp.bfloat16) if l < n_layers - 1 else a

    out_ref[...] = h.astype(out_ref.dtype)      # lane-dense (TB, 128k) store


def item_embedding_forward(x, ws, bs, *, tb=None):
    """Run the fused ItemEmbedding kernel.  ws/bs: per-layer weight (K,N) / bias (1,N)."""
    B, in_dim = x.shape
    emb_dim = ws[-1].shape[1]

    # --- host-side prep: lane-dense final layer + bf16 weights ---------------
    out_pad = _round_up(emb_dim, 128)
    w_last = jnp.zeros((ws[-1].shape[0], out_pad), jnp.float32).at[:, :emb_dim].set(ws[-1])
    b_last = jnp.zeros((1, out_pad), jnp.float32).at[:, :emb_dim].set(bs[-1])
    ws = [w.astype(jnp.bfloat16) for w in list(ws[:-1]) + [w_last]]
    bs = [b.astype(jnp.float32).reshape(1, -1) for b in list(bs[:-1]) + [b_last]]

    # --- batch tiling ---------------------------------------------------------
    if tb is None:
        tb = min(256, _round_up(B, 8))          # multiple of 8 sublanes
    b_pad = _round_up(B, tb)
    x_p = jnp.zeros((b_pad, in_dim), jnp.bfloat16).at[:B].set(x.astype(jnp.bfloat16))

    grid = (b_pad // tb,)
    in_specs = [pl.BlockSpec((tb, in_dim), lambda i: (i, 0))]
    args = [x_p]
    for w, b in zip(ws, bs):
        in_specs.append(pl.BlockSpec(w.shape, lambda i: (0, 0)))   # resident weights
        in_specs.append(pl.BlockSpec(b.shape, lambda i: (0, 0)))   # resident biases
        args.append(w)
        args.append(b)

    out = pl.pallas_call(
        item_embedding_kernel,
        out_shape=jax.ShapeDtypeStruct((b_pad, out_pad), jnp.float32),
        grid=grid,
        in_specs=in_specs,
        out_specs=pl.BlockSpec((tb, out_pad), lambda i: (i, 0)),
        compiler_params=pltpu.CompilerParams(
            dimension_semantics=("parallel",),        # megacore split on v7x
            vmem_limit_bytes=32 * 1024 * 1024,        # safe on v5e/v6e/v7x
        ),
    )(*args)

    return out[:B, :emb_dim]


def make_item_embedding_params(key, n_layer, in_dim, embedding_dim):
    """Deterministic params matching torch.nn.Linear init (hidden biases = 0)."""
    hid = in_dim // 2
    dims = []
    last = in_dim
    for _ in range(n_layer - 1):
        dims.append((last, hid))
        last = hid
    dims.append((last, embedding_dim))

    keys = jax.random.split(key, len(dims) + 1)
    ws, bs = [], []
    for i, (fi, fo) in enumerate(dims):
        bound = 1.0 / math.sqrt(fi)
        w = jax.random.uniform(keys[i], (fi, fo), jnp.float32, -bound, bound)
        if i < len(dims) - 1:
            b = jnp.zeros((1, fo), jnp.float32)          # bias.data.fill_(0.0)
        else:
            b = jax.random.uniform(keys[-1], (1, fo), jnp.float32, -bound, bound)
        ws.append(w)
        bs.append(b)
    return ws, bs


def item_embedding_reference(x, ws, bs):
    """Pure-JAX reference with the same bf16 input/weight rounding as the kernel."""
    h = x.astype(jnp.bfloat16)
    n = len(ws)
    for l, (w, b) in enumerate(zip(ws, bs)):
        wf = w.astype(jnp.bfloat16).astype(jnp.float32)
        z = jnp.dot(h.astype(jnp.float32), wf) + b
        a = 1.0 / (1.0 + jnp.exp(-z))
        h = a.astype(jnp.bfloat16) if l < n - 1 else a
    return h


if __name__ == "__main__":
    N_LAYER, IN_DIM, EMB_DIM, B = 3, 32, 32, 8

    key = jax.random.PRNGKey(0)
    k_x, k_p = jax.random.split(key)
    x = jax.random.normal(k_x, (B, IN_DIM), jnp.float32)
    ws, bs = make_item_embedding_params(k_p, N_LAYER, IN_DIM, EMB_DIM)

    out = item_embedding_forward(x, ws, bs)
    out = jax.block_until_ready(out)

    ref = item_embedding_reference(x, ws, bs)
    assert out.shape == (B, EMB_DIM)
    assert jnp.allclose(out, ref, atol=5e-3, rtol=5e-3), float(jnp.max(jnp.abs(out - ref)))
    print("KERNEL_OK")
</pallas_src>

<mosaic_0001>
module attributes {stable_mosaic.version = 11 : i64} {
  func.func @item_embedding_kernel(%arg0: i32, %arg1: memref<8x32xbf16, #tpu.memory_space<vmem>>, %arg2: memref<32x16xbf16, #tpu.memory_space<vmem>>, %arg3: memref<1x16xf32, #tpu.memory_space<vmem>>, %arg4: memref<16x16xbf16, #tpu.memory_space<vmem>>, %arg5: memref<1x16xf32, #tpu.memory_space<vmem>>, %arg6: memref<16x128xbf16, #tpu.memory_space<vmem>>, %arg7: memref<1x128xf32, #tpu.memory_space<vmem>>, %arg8: memref<8x128xf32, #tpu.memory_space<vmem>>) attributes {dimension_semantics = [#tpu.dimension_semantics<parallel>], iteration_bounds = array<i64: 1>, scalar_prefetch = 0 : i64, scratch_operands = 0 : i64, tpu.core_type = #tpu.core_type<tc>, window_params = [{transform_indices = @transform_0, window_bounds = array<i64: 8, 32>}, {pipeline_mode = #tpu.pipeline_mode<synchronous>, transform_indices = @transform_1, window_bounds = array<i64: 32, 16>}, {pipeline_mode = #tpu.pipeline_mode<synchronous>, transform_indices = @transform_2, window_bounds = array<i64: 1, 16>}, {pipeline_mode = #tpu.pipeline_mode<synchronous>, transform_indices = @transform_3, window_bounds = array<i64: 16, 16>}, {pipeline_mode = #tpu.pipeline_mode<synchronous>, transform_indices = @transform_4, window_bounds = array<i64: 1, 16>}, {pipeline_mode = #tpu.pipeline_mode<synchronous>, transform_indices = @transform_5, window_bounds = array<i64: 16, 128>}, {pipeline_mode = #tpu.pipeline_mode<synchronous>, transform_indices = @transform_6, window_bounds = array<i64: 1, 128>}, {transform_indices = @transform_7, window_bounds = array<i64: 8, 128>}]} {
    %c0 = arith.constant 0 : index
    %c0_0 = arith.constant 0 : index
    %0 = vector.load %arg1[%c0, %c0_0] : memref<8x32xbf16, #tpu.memory_space<vmem>>, vector<8x32xbf16>
    %c0_1 = arith.constant 0 : index
    %c0_2 = arith.constant 0 : index
    %1 = vector.load %arg2[%c0_1, %c0_2] : memref<32x16xbf16, #tpu.memory_space<vmem>>, vector<32x16xbf16>
    %c0_3 = arith.constant 0 : index
    %c0_4 = arith.constant 0 : index
    %2 = vector.load %arg3[%c0_3, %c0_4] : memref<1x16xf32, #tpu.memory_space<vmem>>, vector<1x16xf32>
    %cst = arith.constant dense<0.000000e+00> : vector<8x16xf32>
    %3 = tpu.matmul %0, %1, %cst {dimension_numbers = #tpu.dot_dimension_numbers<[1], [0], [0], [1], [0, 0, 1, 1], [], []>} : vector<8x32xbf16>, vector<32x16xbf16>, vector<8x16xf32> -> vector<8x16xf32>
    %4 = vector.broadcast %2 : vector<1x16xf32> to vector<8x16xf32>
    %5 = arith.addf %3, %4 : vector<8x16xf32>
    %cst_5 = arith.constant 0.000000e+00 : f32
    %6 = vector.broadcast %cst_5 : f32 to vector<8x16xf32>
    %7 = arith.subf %6, %5 : vector<8x16xf32>
    %8 = math.exp %7 : vector<8x16xf32>
    %cst_6 = arith.constant 1.000000e+00 : f32
    %9 = vector.broadcast %cst_6 : f32 to vector<8x16xf32>
    %10 = arith.addf %9, %8 : vector<8x16xf32>
    %cst_7 = arith.constant 1.000000e+00 : f32
    %11 = vector.broadcast %cst_7 : f32 to vector<8x16xf32>
    %12 = arith.divf %11, %10 : vector<8x16xf32>
    %13 = arith.truncf %12 : vector<8x16xf32> to vector<8x16xbf16>
    %c0_8 = arith.constant 0 : index
    %c0_9 = arith.constant 0 : index
    %14 = vector.load %arg4[%c0_8, %c0_9] : memref<16x16xbf16, #tpu.memory_space<vmem>>, vector<16x16xbf16>
    %c0_10 = arith.constant 0 : index
    %c0_11 = arith.constant 0 : index
    %15 = vector.load %arg5[%c0_10, %c0_11] : memref<1x16xf32, #tpu.memory_space<vmem>>, vector<1x16xf32>
    %cst_12 = arith.constant dense<0.000000e+00> : vector<8x16xf32>
    %16 = tpu.matmul %13, %14, %cst_12 {dimension_numbers = #tpu.dot_dimension_numbers<[1], [0], [0], [1], [0, 0, 1, 1], [], []>} : vector<8x16xbf16>, vector<16x16xbf16>, vector<8x16xf32> -> vector<8x16xf32>
    %17 = vector.broadcast %15 : vector<1x16xf32> to vector<8x16xf32>
    %18 = arith.addf %16, %17 : vector<8x16xf32>
    %cst_13 = arith.constant 0.000000e+00 : f32
    %19 = vector.broadcast %cst_13 : f32 to vector<8x16xf32>
    %20 = arith.subf %19, %18 : vector<8x16xf32>
    %21 = math.exp %20 : vector<8x16xf32>
    %cst_14 = arith.constant 1.000000e+00 : f32
    %22 = vector.broadcast %cst_14 : f32 to vector<8x16xf32>
    %23 = arith.addf %22, %21 : vector<8x16xf32>
    %cst_15 = arith.constant 1.000000e+00 : f32
    %24 = vector.broadcast %cst_15 : f32 to vector<8x16xf32>
    %25 = arith.divf %24, %23 : vector<8x16xf32>
    %26 = arith.truncf %25 : vector<8x16xf32> to vector<8x16xbf16>
    %c0_16 = arith.constant 0 : index
    %c0_17 = arith.constant 0 : index
    %27 = vector.load %arg6[%c0_16, %c0_17] : memref<16x128xbf16, #tpu.memory_space<vmem>>, vector<16x128xbf16>
    %c0_18 = arith.constant 0 : index
    %c0_19 = arith.constant 0 : index
    %28 = vector.load %arg7[%c0_18, %c0_19] : memref<1x128xf32, #tpu.memory_space<vmem>>, vector<1x128xf32>
    %cst_20 = arith.constant dense<0.000000e+00> : vector<8x128xf32>
    %29 = tpu.matmul %26, %27, %cst_20 {dimension_numbers = #tpu.dot_dimension_numbers<[1], [0], [0], [1], [0, 0, 1, 1], [], []>} : vector<8x16xbf16>, vector<16x128xbf16>, vector<8x128xf32> -> vector<8x128xf32>
    %30 = vector.broadcast %28 : vector<1x128xf32> to vector<8x128xf32>
    %31 = arith.addf %29, %30 : vector<8x128xf32>
    %cst_21 = arith.constant 0.000000e+00 : f32
    %32 = vector.broadcast %cst_21 : f32 to vector<8x128xf32>
    %33 = arith.subf %32, %31 : vector<8x128xf32>
    %34 = math.exp %33 : vector<8x128xf32>
    %cst_22 = arith.constant 1.000000e+00 : f32
    %35 = vector.broadcast %cst_22 : f32 to vector<8x128xf32>
    %36 = arith.addf %35, %34 : vector<8x128xf32>
    %cst_23 = arith.constant 1.000000e+00 : f32
    %37 = vector.broadcast %cst_23 : f32 to vector<8x128xf32>
    %38 = arith.divf %37, %36 : vector<8x128xf32>
    %c0_24 = arith.constant 0 : index
    %c0_25 = arith.constant 0 : index
    %39 = vector.load %arg8[%c0_24, %c0_25] : memref<8x128xf32, #tpu.memory_space<vmem>>, vector<8x128xf32>
    tpu.vector_store %arg8[%c0_24, %c0_25], %38 {strides = array<i32>} : memref<8x128xf32, #tpu.memory_space<vmem>>, vector<8x128xf32>,
    return
  }
  func.func @transform_0(%arg0: i32) -> (i32, i32) {
    %c0_i32 = arith.constant 0 : i32
    %c0_i32_0 = arith.constant 0 : i32
    return %arg0, %c0_i32 : i32, i32
  }
  func.func @transform_1(%arg0: i32) -> (i32, i32) {
    %c0_i32 = arith.constant 0 : i32
    %c0_i32_0 = arith.constant 0 : i32
    %c0_i32_1 = arith.constant 0 : i32
    return %c0_i32, %c0_i32_0 : i32, i32
  }
  func.func @transform_2(%arg0: i32) -> (i32, i32) {
    %c0_i32 = arith.constant 0 : i32
    %c0_i32_0 = arith.constant 0 : i32
    %c0_i32_1 = arith.constant 0 : i32
    return %c0_i32, %c0_i32_0 : i32, i32
  }
  func.func @transform_3(%arg0: i32) -> (i32, i32) {
    %c0_i32 = arith.constant 0 : i32
    %c0_i32_0 = arith.constant 0 : i32
    %c0_i32_1 = arith.constant 0 : i32
    return %c0_i32, %c0_i32_0 : i32, i32
  }
  func.func @transform_4(%arg0: i32) -> (i32, i32) {
    %c0_i32 = arith.constant 0 : i32
    %c0_i32_0 = arith.constant 0 : i32
    %c0_i32_1 = arith.constant 0 : i32
    return %c0_i32, %c0_i32_0 : i32, i32
  }
  func.func @transform_5(%arg0: i32) -> (i32, i32) {
    %c0_i32 = arith.constant 0 : i32
    %c0_i32_0 = arith.constant 0 : i32
    %c0_i32_1 = arith.constant 0 : i32
    return %c0_i32, %c0_i32_0 : i32, i32
  }
  func.func @transform_6(%arg0: i32) -> (i32, i32) {
    %c0_i32 = arith.constant 0 : i32
    %c0_i32_0 = arith.constant 0 : i32
    %c0_i32_1 = arith.constant 0 : i32
    return %c0_i32, %c0_i32_0 : i32, i32
  }
  func.func @transform_7(%arg0: i32) -> (i32, i32) {
    %c0_i32 = arith.constant 0 : i32
    %c0_i32_0 = arith.constant 0 : i32
    return %arg0, %c0_i32 : i32, i32
  }
}

</mosaic_0001>

<bundles_post_ra>
// kernel: tpu_custom_call.1
= control target key start
LH: loop header
LB: loop body
LE: loop exit
PB: predicated region body
PF: predicated region fallthrough
CT: control target
= control target key end

     0   :  { %v328_v1 = vmov 0.0   ;;  %vm329_vm0 = vmmov 0   ;;  %s412_s0 = inlined_call_operand.vmem [shape: bf16[8,32], index: 0, kind: input, shape index: {}]   ;;  %s413_s1 = inlined_call_operand.vmem [shape: bf16[32,16], index: 1, kind: input, shape index: {}]   ;;  %s414_s2 = inlined_call_operand.vmem [shape: f32[1,16], index: 2, kind: input, shape index: {}]   ;;  %s415_s3 = inlined_call_operand.vmem [shape: bf16[16,16], index: 3, kind: input, shape index: {}]   ;;  %s416_s4 = inlined_call_operand.vmem [shape: f32[1,16], index: 4, kind: input, shape index: {}]   ;;  %s417_s5 = inlined_call_operand.vmem [shape: bf16[16,128], index: 5, kind: input, shape index: {}]   ;;  %s418_s6 = inlined_call_operand.vmem [shape: f32[1,128], index: 6, kind: input, shape index: {}]   ;;  %s419_s7 = inlined_call_operand.hbm [shape: f32[8,128], index: 7, kind: output, shape index: {}]  }
   0x1   :  { %v288_v0 = vld [vmem:[%s413_s1] sm:$0xff]   ;;  %265 = vmatprep.subr.bf16.mxu0 %v328_v1  ;;  %273 = vmatprep.subr.bf16.mxu1 %v328_v1  ;;  %v289_v2 = vld [vmem:[%s413_s1 + $0x8] sm:$0xff]  }
   0x2   :  { %266 = vmatpush3.bf16.msra.mxu0 %v288_v0  ;;  %269 = vmatprep.mubr.msk.bf16.mxu0 %vm329_vm0, %v328_v1 }
   0x3   :  { %267 = vmatprep.subr.bf16.mxu0 %v328_v1  ;;  %275 = vmatprep.mubr.msk.bf16.mxu1 %vm329_vm0, %v328_v1 }
   0x4   :  { %12 = vsyncpa [#allocation3], 0  ;;  %v28_v3 = vld [vmem:[%s412_s0] sm:$0xf]  ;;  %vm52_vm1 = vcmask 261120   ;;  %vm118_vm2 = vcmask 130048  }
   0x5   :  { %v290_v4 = vld [vmem:[%s415_s3] sm:$0xff]  }
   0x6   :  { %268 = vmatpush3.bf16.msra.mxu0 %v289_v2  ;;  %274 = vmatpush3.bf16.msra.mxu1 %v290_v4  ;;  %v248_v5 = vld [vmem:[%s414_s2] ss:$0 sm:$0xff] }
   0x7   :  { %279 = vmatprep.subr.bf16.mxu1 %v328_v1  ;;  %v291_v17 = vld [vmem:[%s417_s5] sm:$0xff]  }
   0x8   :  { %v252_v18 = vld [vmem:[%s416_s4] ss:$0 sm:$0xff]  ;;  %s330_s4 = smov [#allocation2]  }
   0x9   :  { %270 = vmatmul.mubr.msk.bf16.vlgmr.msra.gmra.mrb[0].mxu0 %vm52_vm1, %v28_v3  ;;  %v255_v30 = vld [vmem:[%s418_s6] ss:$0 sm:$0xff]  ;;  %s240_s12 = sshll.u32 %s330_s4, 4  ;;  %s241_s12 = int_to_ptr.vmem [resolvable:$true] %s240_s12 }
   0xa   :  { %s304_s13 = scalar_lea.vmem %s241_s12, 128  ;;  %p309_p1 = scmp.lt.s32.totalorder %s241_s12, %s241_s12 }
   0xb   :  { %p305_p0 = scmp.ne.s32.totalorder %s241_s12, %s304_s13  ;;  %p310_p2 = scmp.lt.s32.totalorder %s304_s13, %s304_s13 }
   0xd   :  { %p311_p3 = por %p310_p2, %p309_p1 }
   0xf   :  { %p312_p4 = pnand %p311_p3, %p305_p0 }
  0xdc   :  { %v90_v6 = vpop.f32.mrb[0].mxu0 }
  0xdd   :  { %v91_v7 = vadd.f32 %v248_v5, %v90_v6  ;;  %v271_v8 = vpop.f32.mrb[1].mxu0 }
  0xde   :  { %v93_v9 = vpop.f32.mrb[2].mxu0 }
  0xdf   :  { %v96_v10 = vsub.f32 0.0, %v91_v7  ;;  %v272_v11 = vpop.f32.mrb[3].mxu0 }
  0xe1   :  { %v97_v12 = vmul.f32 1.442695, %v96_v10 }
  0xe3   :  { %292 = vpow2.f32 %v97_v12 }
  0xed   :  { %v293_v13 = vpop.eup %292 }
  0xee   :  { %v99_v14 = vadd.f32 1.0, %v293_v13 }
  0xf0   :  { %294 = vrcp.f32 %v99_v14 }
  0xfa   :  { %v295_v15 = vpop.eup %294 }
  0xfb   :  { %v102_v16 = vpack.c.bf16 %v295_v15, %v295_v15 }
  0xfd   :  { %276 = vmatmul.mubr.msk.bf16.vlgmr.msra.gmra.mrb[0].mxu1 %vm118_vm2, %v102_v16 }
  0xfe   :  { %281 = vmatprep.mubr.msk.bf16.mxu1 %vm329_vm0, %v328_v1  ;;  %280 = vmatpush3.bf16.msra.mxu1 %v291_v17 }
 0x1d0   :  { %v156_v19 = vpop.f32.mrb[0].mxu1 }
 0x1d1   :  { %v157_v20 = vadd.f32 %v252_v18, %v156_v19  ;;  %v277_v21 = vpop.f32.mrb[1].mxu1 }
 0x1d2   :  { %v159_v22 = vpop.f32.mrb[2].mxu1 }
 0x1d3   :  { %v162_v23 = vsub.f32 0.0, %v157_v20  ;;  %v278_v24 = vpop.f32.mrb[3].mxu1 }
 0x1d5   :  { %v163_v25 = vmul.f32 1.442695, %v162_v23 }
 0x1d7   :  { %296 = vpow2.f32 %v163_v25 }
 0x1e1   :  { %v297_v26 = vpop.eup %296 }
 0x1e2   :  { %v165_v27 = vadd.f32 1.0, %v297_v26 }
 0x1e4   :  { %298 = vrcp.f32 %v165_v27 }
 0x1ee   :  { %v299_v28 = vpop.eup %298 }
 0x1ef   :  { %v168_v29 = vpack.c.bf16 %v299_v28, %v299_v28 }
 0x1f1   :  { %282 = vmatmul.mubr.msk.bf16.vlgmr.msra.gmra.mrb[4].mxu1 %vm118_vm2, %v168_v29 }
 0x2c4   :  { %v221_v31 = vpop.f32.mrb[4].mxu1 }
 0x2c5   :  { %v222_v32 = vadd.f32 %v255_v30, %v221_v31  ;;  %v283_v33 = vpop.f32.mrb[5].mxu1 }
 0x2c6   :  { %v224_v34 = vpop.f32.mrb[6].mxu1 }
 0x2c7   :  { %v227_v35 = vsub.f32 0.0, %v222_v32  ;;  %v284_v36 = vpop.f32.mrb[7].mxu1 }
 0x2c9   :  { %v228_v37 = vmul.f32 1.442695, %v227_v35 }
 0x2cb   :  { %300 = vpow2.f32 %v228_v37 }
 0x2d5   :  { %v301_v38 = vpop.eup %300 }
 0x2d6   :  { %v230_v39 = vadd.f32 1.0, %v301_v38 }
 0x2d8   :  { %302 = vrcp.f32 %v230_v39 }
 0x2e2   :  { %v303_v40 = vpop.eup %302 }
 0x2e3   :  { %233 = vst [vmem:[#allocation2] sm:$0xff] %v303_v40 }
 0x2e4   :  { %315 = shalt.err (!%p312_p4)
}
 0x2e5   :  { %s316_s15 = scalar_lea.hbm %s419_s7, 128 }
 0x2e6   :  { %p317_p5 = scmp.ne.s32.totalorder %s419_s7, %s316_s15  ;;  %p320_p6 = scmp.lt.u32.totalorder %s316_s15, %s419_s7 }
 0x2e8   :  { %p322_p7 = pnand %p320_p6, %p317_p5 }
 0x2ea   :  { %325 = shalt.err (!%p322_p7)
}
 0x2eb   :  { %243 = dma.vmem_to_hbm [thread:$0]  %s241_s12, 128, %s419_s7, [#allocation3]  }
 0x2ec   :  { %326 = dma.done.wait [#allocation3], 128  }
 0x2ed   :  { %327 = vsyncadd [#allocation3], 4294967168 }
 0x2ee   :  { %247 = vsyncpa [#allocation3], 1 }

</bundles_post_ra>
